<compile_context>
chip_gen: v5e
topology: v5e:2x2
jax: 0.10.0
libtpu: 0.0.40
codegen_flags: <defaults>
</compile_context>

<pallas_src>
import functools

import jax
import jax.numpy as jnp
from jax.experimental import pallas as pl
from jax.experimental.pallas import tpu as pltpu

VMEM_LIMIT = 32 * 1024 * 1024   # safe on v5e/v6e/v7x; tiles below use < 8 MiB
AGG_TM = 512                    # aggregation (adj @ XW) row tile
AGG_TK = 512                    # aggregation reduction tile


# ----------------------------------------------------------------------------
# helpers
# ----------------------------------------------------------------------------
def _round_up(x, m):
    return (x + m - 1) // m * m


def _pad_2d(x, rows, cols):
    r, c = x.shape
    if r == rows and c == cols:
        return x
    return jnp.pad(x, ((0, rows - r), (0, cols - c)))


def _agg_tiles(n):
    tm = min(AGG_TM, _round_up(n, 8))
    tk = min(AGG_TK, _round_up(n, 128))
    return tm, tk


# ----------------------------------------------------------------------------
# Matmul kernels
# ----------------------------------------------------------------------------
def _mm_kernel(a_ref, b_ref, bias_ref, o_ref, acc_ref, *, apply_relu):
    k = pl.program_id(2)
    prod = jnp.dot(a_ref[...], b_ref[...], preferred_element_type=jnp.float32)

    @pl.when(k == 0)
    def _():
        acc_ref[...] = prod

    @pl.when(k > 0)
    def _():
        acc_ref[...] += prod

    @pl.when(k == pl.num_programs(2) - 1)
    def _():
        h = acc_ref[...] + bias_ref[...]
        if apply_relu:
            h = jnp.maximum(h, 0.0)
        o_ref[...] = h.astype(o_ref.dtype)


def _mm_norm_kernel(a_ref, b_ref, self_ref, dinv_ref, bias_ref, o_ref, acc_ref,
                    *, apply_relu):
    """acc = A @ (dinv*XW); finalize: dinv * (acc + dinv*XW_selfrow) + bias."""
    k = pl.program_id(2)
    prod = jnp.dot(a_ref[...], b_ref[...], preferred_element_type=jnp.float32)

    @pl.when(k == 0)
    def _():
        acc_ref[...] = prod

    @pl.when(k > 0)
    def _():
        acc_ref[...] += prod

    @pl.when(k == pl.num_programs(2) - 1)
    def _():
        h = dinv_ref[...] * (acc_ref[...] + self_ref[...].astype(jnp.float32))
        h = h + bias_ref[...]
        if apply_relu:
            h = jnp.maximum(h, 0.0)
        o_ref[...] = h.astype(o_ref.dtype)


def _matmul_core(a_p, b_p, bias_p, *, tm, tn, tk, out_dtype, apply_relu,
                 self_p=None, dinv_p=None):
    mp, kp = a_p.shape
    _, np_ = b_p.shape
    grid = (mp // tm, np_ // tn, kp // tk)

    in_specs = [
        pl.BlockSpec((tm, tk), lambda i, j, kk: (i, kk)),
        pl.BlockSpec((tk, tn), lambda i, j, kk: (kk, j)),
    ]
    inputs = [a_p, b_p]
    if self_p is not None:
        in_specs += [
            pl.BlockSpec((tm, tn), lambda i, j, kk: (i, j)),
            pl.BlockSpec((tm, 1), lambda i, j, kk: (i, 0)),
        ]
        inputs += [self_p, dinv_p]
        kernel = functools.partial(_mm_norm_kernel, apply_relu=apply_relu)
    else:
        kernel = functools.partial(_mm_kernel, apply_relu=apply_relu)
    in_specs.append(pl.BlockSpec((1, tn), lambda i, j, kk: (0, j)))
    inputs.append(bias_p)

    return pl.pallas_call(
        kernel,
        out_shape=jax.ShapeDtypeStruct((mp, np_), out_dtype),
        grid=grid,
        in_specs=in_specs,
        out_specs=pl.BlockSpec((tm, tn), lambda i, j, kk: (i, j)),
        scratch_shapes=[pltpu.VMEM((tm, tn), jnp.float32)],
        compiler_params=pltpu.CompilerParams(
            dimension_semantics=("parallel", "parallel", "arbitrary"),
            vmem_limit_bytes=VMEM_LIMIT),
        cost_estimate=pl.CostEstimate(
            flops=2 * mp * np_ * kp,
            transcendentals=0,
            bytes_accessed=(mp * kp + kp * np_) * 2 + mp * np_ * 4),
    )(*inputs)


def matmul_bias_act(a, b, bias=None, *, apply_relu=False,
                    out_dtype=jnp.float32, tm=512, tn=256, tk=512):
    """act(a @ b + bias); operands already in bf16 are not re-cast."""
    m, k = a.shape
    k2, n = b.shape
    assert k == k2
    tm = min(tm, _round_up(m, 8))
    tn = min(tn, _round_up(n, 128))
    tk = min(tk, _round_up(k, 128))
    mp, kp, np_ = _round_up(m, tm), _round_up(k, tk), _round_up(n, tn)

    a_p = _pad_2d(a.astype(jnp.bfloat16), mp, kp)
    b_p = _pad_2d(b.astype(jnp.bfloat16), kp, np_)
    if bias is None:
        bias = jnp.zeros((1, n), jnp.float32)
    bias_p = _pad_2d(bias.reshape(1, -1).astype(jnp.float32), 1, np_)

    out = _matmul_core(a_p, b_p, bias_p, tm=tm, tn=tn, tk=tk,
                       out_dtype=out_dtype, apply_relu=apply_relu)
    return out[:m, :n]


def gcn_aggregate(adj_p, xw, bias=None, *, n, dinv=None, apply_relu=False,
                  out_dtype=jnp.float32, tn=256):
    """Aggregation stage of a GCN layer over a PRE-PADDED bf16 adjacency.

    dinv is None : act(adj_p @ xw + bias)                 (adjacency already normalized)
    dinv given   : act(D^-1/2 (adj+I) D^-1/2 @ xw + bias) (normalization folded in)
    """
    mp, kp = adj_p.shape
    tm, tk = _agg_tiles(n)
    assert mp % tm == 0 and kp % tk == 0
    d = xw.shape[1]
    tn = min(tn, _round_up(d, 128))
    np_ = _round_up(d, tn)

    if bias is None:
        bias = jnp.zeros((1, d), jnp.float32)
    bias_p = _pad_2d(bias.reshape(1, -1).astype(jnp.float32), 1, np_)

    if dinv is None:
        b_p = _pad_2d(xw.astype(jnp.bfloat16), kp, np_)
        out = _matmul_core(adj_p, b_p, bias_p, tm=tm, tn=tn, tk=tk,
                           out_dtype=out_dtype, apply_relu=apply_relu)
    else:
        xw_scaled = (dinv[:n] * xw.astype(jnp.float32)).astype(jnp.bfloat16)
        b_p = _pad_2d(xw_scaled, kp, np_)      # B operand (indexed by k block)
        self_p = _pad_2d(xw_scaled, mp, np_)   # self-loop term (indexed by row block)
        out = _matmul_core(adj_p, b_p, bias_p, tm=tm, tn=tn, tk=tk,
                           out_dtype=out_dtype, apply_relu=apply_relu,
                           self_p=self_p, dinv_p=dinv)
    return out[:n, :d]


# ----------------------------------------------------------------------------
# Fused "cast adj_new to padded bf16 + per-row degree sums" (one N^2 read)
# ----------------------------------------------------------------------------
def _cast_rowsum_kernel(a_ref, o_ref, rs_ref, acc_ref):
    j = pl.program_id(1)
    a = a_ref[...]
    o_ref[...] = a.astype(jnp.bfloat16)
    part = jnp.sum(a, axis=1, keepdims=True)

    @pl.when(j == 0)
    def _():
        acc_ref[...] = part

    @pl.when(j > 0)
    def _():
        acc_ref[...] += part

    @pl.when(j == pl.num_programs(1) - 1)
    def _():
        rs_ref[...] = acc_ref[...]


def cast_pad_rowsum(adj, mp, kp, tm, tk):
    adj_p = _pad_2d(adj.astype(jnp.float32), mp, kp)
    return pl.pallas_call(
        _cast_rowsum_kernel,
        out_shape=(jax.ShapeDtypeStruct((mp, kp), jnp.bfloat16),
                   jax.ShapeDtypeStruct((mp, 1), jnp.float32)),
        grid=(mp // tm, kp // tk),
        in_specs=[pl.BlockSpec((tm, tk), lambda i, j: (i, j))],
        out_specs=[pl.BlockSpec((tm, tk), lambda i, j: (i, j)),
                   pl.BlockSpec((tm, 1), lambda i, j: (i, 0))],
        scratch_shapes=[pltpu.VMEM((tm, 1), jnp.float32)],
        compiler_params=pltpu.CompilerParams(
            dimension_semantics=("parallel", "arbitrary"),
            vmem_limit_bytes=VMEM_LIMIT),
    )(adj_p)


# ----------------------------------------------------------------------------
# Inner product decoder: adj_logits = Z @ Z.T (Z = relu(mean), relu applied in
# the producing layer).  Tiled over (i, j) output blocks.
# TODO(synk): adj_logits is symmetric, but it is a module output so the full
# N^2 matrix must be materialized; the half-triangle compute skip is omitted.
# ----------------------------------------------------------------------------
def _inner_product_kernel(zi_ref, zj_ref, o_ref):
    o_ref[...] = jax.lax.dot_general(
        zi_ref[...], zj_ref[...], (((1,), (1,)), ((), ())),
        preferred_element_type=jnp.float32)


def inner_product(z, t=512):
    n, d = z.shape
    t = min(t, _round_up(n, 128))
    np_ = _round_up(n, t)
    dp = _round_up(d, 128)
    z_p = _pad_2d(z.astype(jnp.bfloat16), np_, dp)

    out = pl.pallas_call(
        _inner_product_kernel,
        out_shape=jax.ShapeDtypeStruct((np_, np_), jnp.float32),
        grid=(np_ // t, np_ // t),
        in_specs=[
            pl.BlockSpec((t, dp), lambda i, j: (i, 0)),
            pl.BlockSpec((t, dp), lambda i, j: (j, 0)),
        ],
        out_specs=pl.BlockSpec((t, t), lambda i, j: (i, j)),
        compiler_params=pltpu.CompilerParams(
            dimension_semantics=("parallel", "parallel"),
            vmem_limit_bytes=VMEM_LIMIT),
        cost_estimate=pl.CostEstimate(
            flops=2 * np_ * np_ * dp,
            transcendentals=0,
            bytes_accessed=2 * np_ * dp * 2 + np_ * np_ * 4),
    )(z_p, z_p)
    return out[:n, :n]


# ----------------------------------------------------------------------------
# Symmetric GCN normalization D^{-1/2}(A+I)D^{-1/2}  (demo-only helper: builds
# the normalized input adjacency fed to ep_net; nc_net's normalization is
# folded into the aggregation kernel instead).
# ----------------------------------------------------------------------------
def _normalize_kernel(a_ref, dr_ref, dc_ref, o_ref):
    i = pl.program_id(0)
    j = pl.program_id(1)
    tm, tn = a_ref.shape
    row = jax.lax.broadcasted_iota(jnp.int32, (tm, tn), 0) + i * tm
    col = jax.lax.broadcasted_iota(jnp.int32, (tm, tn), 1) + j * tn
    a = a_ref[...] + (row == col).astype(jnp.float32)
    o_ref[...] = a * dr_ref[...] * dc_ref[...]


def normalize_adj(adj, t=512):
    n = adj.shape[0]
    t = min(t, _round_up(n, 128))
    np_ = _round_up(n, t)
    adj_p = _pad_2d(adj.astype(jnp.float32), np_, np_)

    deg = jnp.sum(adj_p, axis=1) + 1.0
    dinv = jax.lax.rsqrt(jnp.maximum(deg, 1e-12))

    out = pl.pallas_call(
        _normalize_kernel,
        out_shape=jax.ShapeDtypeStruct((np_, np_), jnp.float32),
        grid=(np_ // t, np_ // t),
        in_specs=[
            pl.BlockSpec((t, t), lambda i, j: (i, j)),
            pl.BlockSpec((t, 1), lambda i, j: (i, 0)),
            pl.BlockSpec((1, t), lambda i, j: (0, j)),
        ],
        out_specs=pl.BlockSpec((t, t), lambda i, j: (i, j)),
        compiler_params=pltpu.CompilerParams(
            dimension_semantics=("parallel", "parallel"),
            vmem_limit_bytes=VMEM_LIMIT),
    )(adj_p, dinv.reshape(np_, 1), dinv.reshape(1, np_))
    return out[:n, :n]


# ----------------------------------------------------------------------------
# Edge remove / add (top-k selection) — plain-JAX glue.  k (num_delete /
# num_add) is a host-computed static int, matching the PyTorch int(...) count.
# The strict '<' delete threshold intentionally mirrors the PyTorch reference.
# ----------------------------------------------------------------------------
def _triu_mask(n):
    r = jnp.arange(n)
    return r[:, None] < r[None, :]


def _normalized_scores(adj_logits, mask_u):
    mn = jnp.min(jnp.where(mask_u, adj_logits, jnp.inf))
    mx = jnp.max(jnp.where(mask_u, adj_logits, -jnp.inf))
    return (adj_logits - mn) / (mx - mn + 1e-8)


def sample_adj_edge_remove(adj_logits, adj_orig, num_delete):
    if num_delete < 1:
        return adj_orig
    n = adj_orig.shape[0]
    mask_u = _triu_mask(n)
    norm = _normalized_scores(adj_logits, mask_u)
    exist = (adj_orig > 0) & mask_u
    neg = jnp.where(exist, -norm, -jnp.inf).reshape(-1)
    kth = jax.lax.top_k(neg, num_delete)[0][-1]            # num_delete-th smallest
    threshold = -kth
    delete_u = (norm < threshold) & exist                  # strict '<' (matches PyTorch)
    delete = delete_u | delete_u.T
    return jnp.where(delete, 0.0, adj_orig)


def sample_adj_edge_add(adj_logits, adj_orig, num_add, adj_new):
    if num_add < 1:
        return adj_new
    n = adj_orig.shape[0]
    mask_u = _triu_mask(n)
    norm = _normalized_scores(adj_logits, mask_u)
    non_exist = (adj_orig == 0) & mask_u
    cand = jnp.where(non_exist, norm, -jnp.inf).reshape(-1)
    vals, idx = jax.lax.top_k(cand, num_add)
    add_flat = jnp.zeros((n * n,), jnp.float32).at[idx].set(
        jnp.where(jnp.isfinite(vals), 1.0, 0.0))
    add_u = add_flat.reshape(n, n)
    add_full = add_u + add_u.T
    return jnp.where(add_full > 0, 1.0, adj_new)


# ----------------------------------------------------------------------------
# Parameter init (glorot uniform, deterministic)
# ----------------------------------------------------------------------------
def glorot(key, fan_in, fan_out):
    limit = jnp.sqrt(6.0 / (fan_in + fan_out))
    return jax.random.uniform(key, (fan_in, fan_out), jnp.float32, -limit, limit)


def init_params(key, n_feat, n_hidden, n_embed, n_class):
    ks = jax.random.split(key, 4)
    return {
        # ep_net (VGAE) encoder: 2-layer GCN, bias=False
        "ep_w1": glorot(ks[0], n_feat, n_hidden),
        "ep_w2": glorot(ks[1], n_hidden, n_embed),
        # nc_net: 2-layer GCN, bias initialized to zeros
        "nc_w1": glorot(ks[2], n_feat, n_hidden),
        "nc_b1": jnp.zeros((1, n_hidden), jnp.float32),
        "nc_w2": glorot(ks[3], n_hidden, n_class),
        "nc_b2": jnp.zeros((1, n_class), jnp.float32),
    }


# ----------------------------------------------------------------------------
# GSL forward
# ----------------------------------------------------------------------------
def gsl_forward(params, feats, adj, adj_orig, *, num_delete, num_add):
    # TODO(synk): dropout inside GNNEncoder_OpenGSL omitted (eval semantics).
    n = feats.shape[0]
    tm, tk = _agg_tiles(n)
    mp, kp = _round_up(n, tm), _round_up(n, tk)

    # Hoisted bf16 cast + pad of the (already normalized) ep adjacency:
    # done once, reused by both ep_net layers.
    adj_ep_p = _pad_2d(adj.astype(jnp.bfloat16), mp, kp)

    # Shared feature transform X @ [W1_ep | W1_nc]: one wide matmul, feats
    # read from HBM once, >=256 output lanes for the MXU.
    h_ep = params["ep_w1"].shape[1]
    w1_cat = jnp.concatenate([params["ep_w1"], params["nc_w1"]], axis=1)
    xw1 = matmul_bias_act(feats, w1_cat, out_dtype=jnp.bfloat16)
    xw1_ep, xw1_nc = xw1[:, :h_ep], xw1[:, h_ep:]

    # 1) ep_net (VGAE): 2-layer GCN encoder (adj already normalized) -> relu -> Z Z^T
    h1 = gcn_aggregate(adj_ep_p, xw1_ep, n=n, apply_relu=True,
                       out_dtype=jnp.bfloat16)
    xw2 = matmul_bias_act(h1, params["ep_w2"], out_dtype=jnp.bfloat16)
    z = gcn_aggregate(adj_ep_p, xw2, n=n, apply_relu=True,   # relu(mean) == Z
                      out_dtype=jnp.bfloat16)
    adj_logits = inner_product(z)

    # 2) modify adjacency: remove low-score existing edges, add high-score new ones
    adj_new = sample_adj_edge_remove(adj_logits, adj_orig, num_delete)
    adj_new = sample_adj_edge_add(adj_logits, adj_orig, num_add, adj_new)

    # 3) nc_net on the new adjacency.  One fused pass produces the padded bf16
    #    adjacency (reused by both layers) and its row degrees; the symmetric
    #    normalization D^-1/2 (A+I) D^-1/2 is folded into the aggregations, so
    #    adj_new_normed is never materialized.
    adj_new_p, rowsum = cast_pad_rowsum(adj_new, mp, kp, tm, tk)
    dinv = jax.lax.rsqrt(rowsum + 1.0)                      # (mp, 1), +1 self loop

    h2 = gcn_aggregate(adj_new_p, xw1_nc, bias=params["nc_b1"], n=n,
                       dinv=dinv, apply_relu=True, out_dtype=jnp.bfloat16)
    xw3 = matmul_bias_act(h2, params["nc_w2"], out_dtype=jnp.bfloat16)
    output = gcn_aggregate(adj_new_p, xw3, bias=params["nc_b2"], n=n,
                           dinv=dinv, apply_relu=False, out_dtype=jnp.float32)
    return output, adj_logits, adj_new


# ----------------------------------------------------------------------------
# Demo
# ----------------------------------------------------------------------------
if __name__ == "__main__":
    N_NODES, N_FEAT, N_HIDDEN, N_EMBED, N_CLASS = 16, 32, 32, 16, 4
    REMOVE_RATIO, ADD_RATIO = 0.2, 0.2

    key = jax.random.PRNGKey(0)
    k_feat, k_adj, k_param = jax.random.split(key, 3)

    feats = jax.random.normal(k_feat, (N_NODES, N_FEAT), jnp.float32)

    # random symmetric binary adjacency (no self loops)
    upper = (jax.random.uniform(k_adj, (N_NODES, N_NODES)) < 0.3).astype(jnp.float32)
    upper = jnp.triu(upper, k=1)
    adj_orig = upper + upper.T

    # normalized adjacency fed to ep_net (standard GCN input)
    adj_norm = normalize_adj(adj_orig)

    params = init_params(k_param, N_FEAT, N_HIDDEN, N_EMBED, N_CLASS)

    # host-side edge count -> static top-k sizes (mirrors PyTorch's int(...))
    num_exist = int(jnp.sum(jnp.triu(adj_orig, k=1) > 0))
    num_delete = int(num_exist * REMOVE_RATIO)
    num_add = int(num_exist * ADD_RATIO)

    fwd = jax.jit(functools.partial(gsl_forward,
                                    num_delete=num_delete,
                                    num_add=num_add))
    output, adj_logits, adj_new = fwd(params, feats, adj_norm, adj_orig)
    jax.block_until_ready((output, adj_logits, adj_new))

    assert output.shape == (N_NODES, N_CLASS)
    assert adj_logits.shape == (N_NODES, N_NODES)
    assert adj_new.shape == (N_NODES, N_NODES)
    print("KERNEL_OK")
</pallas_src>

<mosaic_0001>
module attributes {stable_mosaic.version = 11 : i64} {
  func.func @_normalize_kernel(%arg0: i32, %arg1: i32, %arg2: memref<128x128xf32, #tpu.memory_space<vmem>>, %arg3: memref<128x1xf32, #tpu.memory_space<vmem>>, %arg4: memref<1x128xf32, #tpu.memory_space<vmem>>, %arg5: memref<128x128xf32, #tpu.memory_space<vmem>>) attributes {dimension_semantics = [#tpu.dimension_semantics<parallel>, #tpu.dimension_semantics<parallel>], iteration_bounds = array<i64: 1, 1>, scalar_prefetch = 0 : i64, scratch_operands = 0 : i64, tpu.core_type = #tpu.core_type<tc>, window_params = [{transform_indices = @transform_0, window_bounds = array<i64: 128, 128>}, {transform_indices = @transform_1, window_bounds = array<i64: 128, 1>}, {transform_indices = @transform_2, window_bounds = array<i64: 1, 128>}, {transform_indices = @transform_3, window_bounds = array<i64: 128, 128>}]} {
    %0 = tpu.iota {dimensions = array<i32: 0>} : vector<128x128xi32>
    %c128_i32 = arith.constant 128 : i32
    %1 = arith.muli %arg0, %c128_i32 : i32
    %2 = vector.broadcast %1 : i32 to vector<128x128xi32>
    %3 = arith.addi %0, %2 : vector<128x128xi32>
    %4 = tpu.iota {dimensions = array<i32: 1>} : vector<128x128xi32>
    %c128_i32_0 = arith.constant 128 : i32
    %5 = arith.muli %arg1, %c128_i32_0 : i32
    %6 = vector.broadcast %5 : i32 to vector<128x128xi32>
    %7 = arith.addi %4, %6 : vector<128x128xi32>
    %c0 = arith.constant 0 : index
    %c0_1 = arith.constant 0 : index
    %8 = vector.load %arg2[%c0, %c0_1] : memref<128x128xf32, #tpu.memory_space<vmem>>, vector<128x128xf32>
    %9 = arith.cmpi eq, %3, %7 : vector<128x128xi32>
    %10 = arith.extui %9 : vector<128x128xi1> to vector<128x128xi32>
    %11 = arith.sitofp %10 : vector<128x128xi32> to vector<128x128xf32>
    %12 = arith.addf %8, %11 : vector<128x128xf32>
    %c0_2 = arith.constant 0 : index
    %c0_3 = arith.constant 0 : index
    %13 = vector.load %arg3[%c0_2, %c0_3] : memref<128x1xf32, #tpu.memory_space<vmem>>, vector<128x1xf32>
    %14 = vector.broadcast %13 : vector<128x1xf32> to vector<128x128xf32>
    %15 = arith.mulf %12, %14 : vector<128x128xf32>
    %c0_4 = arith.constant 0 : index
    %c0_5 = arith.constant 0 : index
    %16 = vector.load %arg4[%c0_4, %c0_5] : memref<1x128xf32, #tpu.memory_space<vmem>>, vector<1x128xf32>
    %17 = vector.broadcast %16 : vector<1x128xf32> to vector<128x128xf32>
    %18 = arith.mulf %15, %17 : vector<128x128xf32>
    %c0_6 = arith.constant 0 : index
    %c0_7 = arith.constant 0 : index
    %19 = vector.load %arg5[%c0_6, %c0_7] : memref<128x128xf32, #tpu.memory_space<vmem>>, vector<128x128xf32>
    tpu.vector_store %arg5[%c0_6, %c0_7], %18 {strides = array<i32>} : memref<128x128xf32, #tpu.memory_space<vmem>>, vector<128x128xf32>,
    return
  }
  func.func @transform_0(%arg0: i32, %arg1: i32) -> (i32, i32) {
    %c0_i32 = arith.constant 0 : i32
    return %arg0, %arg1 : i32, i32
  }
  func.func @transform_1(%arg0: i32, %arg1: i32) -> (i32, i32) {
    %c0_i32 = arith.constant 0 : i32
    %c0_i32_0 = arith.constant 0 : i32
    return %arg0, %c0_i32 : i32, i32
  }
  func.func @transform_2(%arg0: i32, %arg1: i32) -> (i32, i32) {
    %c0_i32 = arith.constant 0 : i32
    %c0_i32_0 = arith.constant 0 : i32
    return %c0_i32, %arg1 : i32, i32
  }
  func.func @transform_3(%arg0: i32, %arg1: i32) -> (i32, i32) {
    %c0_i32 = arith.constant 0 : i32
    return %arg0, %arg1 : i32, i32
  }
}

</mosaic_0001>

<bundles_post_ra>
// kernel: tpu_custom_call.1
= control target key start
LH: loop header
LB: loop body
LE: loop exit
PB: predicated region body
PF: predicated region fallthrough
CT: control target
= control target key end

     0   :  { %v352_v3 = vmov 0   ;;  %s549_s0 = inlined_call_operand.vmem [shape: f32[128,128], index: 0, kind: input, shape index: {}]   ;;  %s550_s1 = inlined_call_operand.vmem [shape: f32[128,1], index: 1, kind: input, shape index: {}]   ;;  %s551_s2 = inlined_call_operand.vmem [shape: f32[1,128], index: 2, kind: input, shape index: {}]   ;;  %s552_s3 = inlined_call_operand.hbm [shape: f32[128,128], index: 3, kind: output, shape index: {}]  }
   0x1   :  { %v139_v0 = vld [vmem:[%s550_s1 + $0x20] sm:$0xff]  ;;  %v137_v1 = vld [vmem:[%s550_s1 + $0x10] sm:$0xff]  ;;  %324 = vset.pattern.permute.xlu2 %v352_v3  ;;  %323 = vset.pattern.permute.xlu1 %v352_v3 }
   0x2   :  { %v135_v2 = vld [vmem:[%s550_s1] sm:$0xff]  ;;  %322 = vset.pattern.permute.xlu0 %v352_v3  ;;  %173 = vperm.xlu2 %324, %v139_v0  }
   0x3   :  { %163 = vperm.xlu1 %323, %v137_v1   ;;  %153 = vperm.xlu0 %322, %v135_v2  }
   0x4   :  { %8 = vsyncpa [#allocation3], 0  ;;  %v140_v4 = vld [vmem:[%s550_s1 + $0x28] sm:$0xff]  ;;  %v138_v5 = vld [vmem:[%s550_s1 + $0x18] sm:$0xff]  ;;  %v15_v17 = vlaneseq  ;;  %v353_v22 = vmov 0.0   ;;  %s354_s21 = smov [#allocation2]  }
   0x5   :  { %v136_v6 = vld [vmem:[%s550_s1 + $0x8] sm:$0xff]  ;;  %v143_v7 = vld [vmem:[%s550_s1 + $0x40] sm:$0xff]  ;;  %v142_v8 = vld [vmem:[%s550_s1 + $0x38] sm:$0xff]  ;;  %s287_s22 = sshll.u32 %s354_s21, 4  ;;  %s289_s24 = sshll.u32 %s552_s3, 4  ;;  %s288_s22 = int_to_ptr.vmem [resolvable:$true] %s287_s22  ;;  %s290_s24 = int_to_ptr.hbm [resolvable:$true] %s289_s24 }
   0x6   :  { %v141_v9 = vld [vmem:[%s550_s1 + $0x30] sm:$0xff]  ;;  %v146_v10 = vld [vmem:[%s550_s1 + $0x58] sm:$0xff]  ;;  %v144_v12 = vld [vmem:[%s550_s1 + $0x48] sm:$0xff]  ;;  %v425_v18 = vshrl.u32 %v15_v17, 7  ;;  %v428_v20 = vand.u32 127, %v15_v17  ;;  %s356_s25 = smov 8  }
   0x7   :  { %v145_v11 = vld [vmem:[%s550_s1 + $0x50] sm:$0xff]  ;;  %v148_v14 = vld [vmem:[%s550_s1 + $0x68] sm:$0xff]  ;;  %v147_v15 = vld [vmem:[%s550_s1 + $0x60] sm:$0xff] }
   0x8   :  { %v149_v13 = vld [vmem:[%s550_s1 + $0x70] sm:$0xff]  ;;  %v150_v16 = vld [vmem:[%s550_s1 + $0x78] sm:$0xff]  ;;  %v20_v19 = vadd.s32 32, %v425_v18  ;;  %v59_v21 = vld [vmem:[%s549_s0 + $0x20] sm:$0xff]  ;;  %v21_v24 = vadd.s32 40, %v425_v18  ;;  %v24_v32 = vadd.s32 64, %v425_v18  ;;  %vm71_vm5 = vcmp.eq.s32.totalorder %v425_v18, %v428_v20 }
   0x9   :  { %v440_v27 = vld [vmem:[%s551_s2] ss:$0 sm:$0xff]  ;;  %v60_v29 = vld [vmem:[%s549_s0 + $0x28] sm:$0xff]  ;;  %v27_v39 = vadd.s32 88, %v425_v18  ;;  %v18_v40 = vadd.s32 16, %v425_v18  ;;  %v66_v44 = vld [vmem:[%s549_s0 + $0x58] sm:$0xff] }
   0xa   :  { %178 = vperm.xlu2 %324, %v140_v4   ;;  %vm75_vm0 = vcmp.eq.s32.totalorder %v20_v19, %v428_v20  ;;  %vm76_vm1 = vcmp.eq.s32.totalorder %v21_v24, %v428_v20  ;;  %vm79_vm2 = vcmp.eq.s32.totalorder %v24_v32, %v428_v20  ;;  %v63_v36 = vld [vmem:[%s549_s0 + $0x40] sm:$0xff]  ;;  %v57_v47 = vld [vmem:[%s549_s0 + $0x10] sm:$0xff]  ;;  %v301_v50 = vsel %vm71_vm5, 1.0, %v353_v22  ;;  %v58_v2 = vld [vmem:[%s549_s0 + $0x18] sm:$0xff] }
   0xb   :  { %168 = vperm.xlu1 %323, %v138_v5   ;;  %158 = vperm.xlu0 %322, %v136_v6   ;;  %v305_v23 = vsel %vm75_vm0, 1.0, %v353_v22  ;;  %v306_v30 = vsel %vm76_vm1, 1.0, %v353_v22  ;;  %v309_v37 = vsel %vm79_vm2, 1.0, %v353_v22  ;;  %vm82_vm3 = vcmp.eq.s32.totalorder %v27_v39, %v428_v20  ;;  %v55_v49 = vld [vmem:[%s549_s0] sm:$0xff]  ;;  %v69_v63 = vld [vmem:[%s549_s0 + $0x70] sm:$0xff]  ;;  %v56_v4 = vld [vmem:[%s549_s0 + $0x8] sm:$0xff] }
   0xc   :  { %v123_v25 = vadd.f32 %v305_v23, %v59_v21  ;;  %v124_v33 = vadd.f32 %v306_v30, %v60_v29  ;;  %v127_v41 = vadd.f32 %v309_v37, %v63_v36  ;;  %vm73_vm4 = vcmp.eq.s32.totalorder %v18_v40, %v428_v20  ;;  %v65_v40 = vld [vmem:[%s549_s0 + $0x50] sm:$0xff] }
   0xd   :  { %v312_v45 = vsel %vm82_vm3, 1.0, %v353_v22  ;;  %v303_v48 = vsel %vm73_vm4, 1.0, %v353_v22  ;;  %v30_v51 = vadd.s32 112, %v425_v18  ;;  %v19_v52 = vadd.s32 24, %v425_v18 }
   0xe   :  { %v17_v53 = vadd.s32 8, %v425_v18  ;;  %v130_v54 = vadd.f32 %v312_v45, %v66_v44  ;;  %v121_v55 = vadd.f32 %v303_v48, %v57_v47  ;;  %v119_v56 = vadd.f32 %v301_v50, %v55_v49 }
   0xf   :  { %vm85_vm6 = vcmp.eq.s32.totalorder %v30_v51, %v428_v20  ;;  %vm74_vm7 = vcmp.eq.s32.totalorder %v19_v52, %v428_v20  ;;  %v26_v32 = vadd.s32 80, %v425_v18  ;;  %v28_v47 = vadd.s32 96, %v425_v18 }
  0x10   :  { %vm72_vm8 = vcmp.eq.s32.totalorder %v17_v53, %v428_v20  ;;  %v315_v0 = vsel %vm85_vm6, 1.0, %v353_v22  ;;  %v304_v3 = vsel %vm74_vm7, 1.0, %v353_v22 }
  0x11   :  { %v302_v5 = vsel %vm72_vm8, 1.0, %v353_v22  ;;  %vm81_vm12 = vcmp.eq.s32.totalorder %v26_v32, %v428_v20  ;;  %vm83_vm15 = vcmp.eq.s32.totalorder %v28_v47, %v428_v20 }
  0x12   :  { %193 = vperm.xlu2 %324, %v143_v7  }
  0x13   :  { %188 = vperm.xlu1 %323, %v142_v8   ;;  %183 = vperm.xlu0 %322, %v141_v9   ;;  %v23_v8 = vadd.s32 56, %v425_v18  ;;  %v22_v9 = vadd.s32 48, %v425_v18 }
  0x15   :  { %vm78_vm10 = vcmp.eq.s32.totalorder %v23_v8, %v428_v20  ;;  %vm77_vm11 = vcmp.eq.s32.totalorder %v22_v9, %v428_v20 }
  0x16   :  { %v307_v29 = vsel %vm77_vm11, 1.0, %v353_v22 }
  0x1a   :  { %208 = vperm.xlu2 %324, %v146_v10   ;;  %v133_v10 = vadd.f32 %v315_v0, %v69_v63  ;;  %v70_v0 = vld [vmem:[%s549_s0 + $0x78] sm:$0xff] }
  0x1b   :  { %203 = vperm.xlu1 %323, %v145_v11   ;;  %198 = vperm.xlu0 %322, %v144_v12   ;;  %v31_v11 = vadd.s32 120, %v425_v18  ;;  %v122_v12 = vadd.f32 %v304_v3, %v58_v2 }
  0x1d   :  { %vm86_vm9 = vcmp.eq.s32.totalorder %v31_v11, %v428_v20 }
  0x22   :  { %223 = vperm.xlu2 %324, %v149_v13   ;;  %v120_v13 = vadd.f32 %v302_v5, %v56_v4 }
  0x23   :  { %218 = vperm.xlu1 %323, %v148_v14   ;;  %213 = vperm.xlu0 %322, %v147_v15   ;;  %v316_v15 = vsel %vm86_vm9, 1.0, %v353_v22 }
  0x24   :  { %v134_v2 = vadd.f32 %v316_v15, %v70_v0 }
  0x2b   :  { %228 = vperm.xlu0 %322, %v150_v16  }
  0x5c   :  { %v174_v26 = vpop.permute.xlu2 %173 }
  0x5d   :  { %v235_v28 = vmul.f32 %v174_v26, %v123_v25  ;;  %v62_v25 = vld [vmem:[%s549_s0 + $0x38] sm:$0xff]  ;;  %v308_v26 = vsel %vm78_vm10, 1.0, %v353_v22 }
  0x5f   :  { %v255_v31 = vmul.f32 %v440_v27, %v235_v28  ;;  %v61_v28 = vld [vmem:[%s549_s0 + $0x30] sm:$0xff] }
  0x61   :  { %271 = vst [vmem:[#allocation2 + $0x20] sm:$0xff] %v255_v31 }
  0x64   :  { %v179_v34 = vpop.permute.xlu2 %178 }
  0x65   :  { %v236_v35 = vmul.f32 %v179_v34, %v124_v33  ;;  %v25_v33 = vadd.s32 72, %v425_v18  ;;  %v126_v34 = vadd.f32 %v308_v26, %v62_v25 }
  0x67   :  { %v256_v38 = vmul.f32 %v440_v27, %v236_v35  ;;  %v125_v35 = vadd.f32 %v307_v29, %v61_v28  ;;  %vm80_vm13 = vcmp.eq.s32.totalorder %v25_v33, %v428_v20 }
  0x69   :  { %272 = vst [vmem:[#allocation2 + $0x28] sm:$0xff] %v256_v38 }
  0x6c   :  { %v194_v42 = vpop.permute.xlu2 %193 }
  0x6d   :  { %v239_v43 = vmul.f32 %v194_v42, %v127_v41  ;;  %v311_v41 = vsel %vm81_vm12, 1.0, %v353_v22  ;;  %v64_v42 = vld [vmem:[%s549_s0 + $0x48] sm:$0xff] }
  0x6e   :  { %v129_v48 = vadd.f32 %v311_v41, %v65_v40 }
  0x6f   :  { %v259_v46 = vmul.f32 %v440_v27, %v239_v43  ;;  %v310_v43 = vsel %vm80_vm13, 1.0, %v353_v22 }
  0x70   :  { %v128_v49 = vadd.f32 %v310_v43, %v64_v42 }
  0x71   :  { %275 = vst [vmem:[#allocation2 + $0x40] sm:$0xff] %v259_v46  ;;  %v29_v46 = vadd.s32 104, %v425_v18  ;;  %v67_v18 = vld [vmem:[%s549_s0 + $0x60] sm:$0xff] }
  0x73   :  { %vm84_vm14 = vcmp.eq.s32.totalorder %v29_v46, %v428_v20 }
  0x74   :  { %v209_v57 = vpop.permute.xlu2 %208 }
  0x75   :  { %v242_v58 = vmul.f32 %v209_v57, %v130_v54  ;;  %v164_v59 = vpop.permute.xlu1 %163  ;;  %v154_v60 = vpop.permute.xlu0 %153  ;;  %v68_v54 = vld [vmem:[%s549_s0 + $0x68] sm:$0xff]  ;;  %s355_s0 = smov 128  }
  0x76   :  { %v233_v61 = vmul.f32 %v164_v59, %v121_v55  ;;  %v231_v62 = vmul.f32 %v154_v60, %v119_v56  ;;  %v314_v55 = vsel %vm84_vm14, 1.0, %v353_v22  ;;  %v313_v56 = vsel %vm83_vm15, 1.0, %v353_v22 }
  0x77   :  { %v262_v1 = vmul.f32 %v440_v27, %v242_v58  ;;  %v132_v58 = vadd.f32 %v314_v55, %v68_v54  ;;  %v131_v59 = vadd.f32 %v313_v56, %v67_v18 }
  0x78   :  { %v253_v6 = vmul.f32 %v440_v27, %v233_v61  ;;  %v251_v7 = vmul.f32 %v440_v27, %v231_v62 }
  0x79   :  { %278 = vst [vmem:[#allocation2 + $0x58] sm:$0xff] %v262_v1 }
  0x7a   :  { %269 = vst [vmem:[#allocation2 + $0x10] sm:$0xff] %v253_v6 }
  0x7b   :  { %267 = vst [vmem:[#allocation2] sm:$0xff] %v251_v7 }
  0x7c   :  { %v224_v14 = vpop.permute.xlu2 %223 }
  0x7d   :  { %v245_v16 = vmul.f32 %v224_v14, %v133_v10  ;;  %v169_v17 = vpop.permute.xlu1 %168  ;;  %v159_v19 = vpop.permute.xlu0 %158 }
  0x7e   :  { %v234_v21 = vmul.f32 %v169_v17, %v122_v12  ;;  %v232_v23 = vmul.f32 %v159_v19, %v120_v13 }
  0x7f   :  { %v265_v24 = vmul.f32 %v440_v27, %v245_v16 }
  0x80   :  { %v254_v30 = vmul.f32 %v440_v27, %v234_v21  ;;  %v252_v31 = vmul.f32 %v440_v27, %v232_v23 }
  0x81   :  { %281 = vst [vmem:[#allocation2 + $0x70] sm:$0xff] %v265_v24 }
  0x82   :  { %270 = vst [vmem:[#allocation2 + $0x18] sm:$0xff] %v254_v30 }
  0x83   :  { %268 = vst [vmem:[#allocation2 + $0x8] sm:$0xff] %v252_v31 }
  0x85   :  { %v189_v36 = vpop.permute.xlu1 %188  ;;  %v184_v37 = vpop.permute.xlu0 %183 }
  0x86   :  { %v238_v38 = vmul.f32 %v189_v36, %v126_v34  ;;  %v237_v39 = vmul.f32 %v184_v37, %v125_v35 }
  0x88   :  { %v258_v44 = vmul.f32 %v440_v27, %v238_v38  ;;  %v257_v45 = vmul.f32 %v440_v27, %v237_v39 }
  0x8a   :  { %274 = vst [vmem:[#allocation2 + $0x38] sm:$0xff] %v258_v44 }
  0x8b   :  { %273 = vst [vmem:[#allocation2 + $0x30] sm:$0xff] %v257_v45 }
  0x8d   :  { %v204_v50 = vpop.permute.xlu1 %203  ;;  %v199_v51 = vpop.permute.xlu0 %198 }
  0x8e   :  { %v241_v52 = vmul.f32 %v204_v50, %v129_v48  ;;  %v240_v53 = vmul.f32 %v199_v51, %v128_v49 }
  0x90   :  { %v261_v57 = vmul.f32 %v440_v27, %v241_v52  ;;  %v260_v20 = vmul.f32 %v440_v27, %v240_v53 }
  0x92   :  { %277 = vst [vmem:[#allocation2 + $0x50] sm:$0xff] %v261_v57 }
  0x93   :  { %276 = vst [vmem:[#allocation2 + $0x48] sm:$0xff] %v260_v20 }
  0x95   :  { %v219_v60 = vpop.permute.xlu1 %218  ;;  %v214_v61 = vpop.permute.xlu0 %213 }
  0x96   :  { %v244_v62 = vmul.f32 %v219_v60, %v132_v58  ;;  %v243_v63 = vmul.f32 %v214_v61, %v131_v59 }
  0x98   :  { %v264_v1 = vmul.f32 %v440_v27, %v244_v62  ;;  %v263_v22 = vmul.f32 %v440_v27, %v243_v63 }
  0x9a   :  { %280 = vst [vmem:[#allocation2 + $0x68] sm:$0xff] %v264_v1 }
  0x9b   :  { %279 = vst [vmem:[#allocation2 + $0x60] sm:$0xff] %v263_v22 }
  0x9d   :  { %v229_v3 = vpop.permute.xlu0 %228 }
  0x9e   :  { %v246_v4 = vmul.f32 %v229_v3, %v134_v2 }
  0xa0   :  { %v266_v5 = vmul.f32 %v440_v27, %v246_v4 }
  0xa2   :  { %282 = vst [vmem:[#allocation2 + $0x78] sm:$0xff] %v266_v5 }
  0xa3   :  { %295 = dma.vmem_to_hbm [thread:$0]  %s288_s22, 2048, %s290_s24, [#allocation3], %s355_s0, %s355_s0, %s356_s25  }
  0xa4   :  { %350 = dma.done.wait [#allocation3], 2048  }
  0xa5   :  { %351 = vsyncadd [#allocation3], 4294965248 }
  0xa6   :  { %300 = vsyncpa [#allocation3], 1 }

</bundles_post_ra>
